<compile_context>
chip_gen: v5e
topology: v5e:2x2
jax: 0.10.0
libtpu: 0.0.40
codegen_flags: <defaults>
</compile_context>

<pallas_src>
import jax
import jax.numpy as jnp
from jax.experimental import pallas as pl
from jax.experimental.pallas import tpu as pltpu

IN_F, HID, OUT_F = 2, 5, 1   # fixed by SimpleNN: Linear(2,5) -> ReLU -> Linear(5,1)
LANES = 128                  # TPU lane width
MAX_TILE_ROWS = 2048         # 2048 rows * 128 lanes = 256K batch elems / grid step


def mlp_kernel(x_ref, w1_ref, b1_ref, w2_ref, b2_ref, o_ref):
    """x_ref: (IN_F, tile_rows, 128) VMEM, batch packed into dense vregs.
    w1_ref: (IN_F*HID,) SMEM, b1_ref: (HID,) SMEM, w2_ref: (HID,) SMEM,
    b2_ref: (1,) SMEM.  o_ref: (OUT_F, tile_rows, 128) VMEM."""
    # Hoist every SMEM scalar read once (one sld each, before the vector chain).
    w1 = [[w1_ref[i * HID + j] for j in range(HID)] for i in range(IN_F)]
    b1 = [b1_ref[j] for j in range(HID)]
    w2 = [w2_ref[j] for j in range(HID)]
    b2 = b2_ref[0]

    # Dense (tile_rows, 128) activation slabs, one per input feature.
    xs = [x_ref[i] for i in range(IN_F)]

    acc = None
    for j in range(HID):
        # h_j = b1[j] + sum_i w1[i, j] * x[i]   (pure VPU scalar*vector FMAs)
        h = xs[0] * w1[0][j] + b1[j]
        for i in range(1, IN_F):
            h = h + xs[i] * w1[i][j]
        term = jnp.maximum(h, 0.0) * w2[j]      # ReLU, then second layer weight
        acc = term if acc is None else acc + term

    o_ref[...] = (acc + b2)[None].astype(o_ref.dtype)


def simple_nn_forward_feature_major(x_fm, w1, b1, w2, b2):
    """Preferred entry: x_fm is (IN_F, B) float32 (feature-major), so no extra
    transpose HBM pass is needed.  w1: (2,5) (= torch W1.T), b1: (1,5)/(5,),
    w2: (5,1) (= torch W2.T), b2: (1,1)/(1,).  Returns (B, 1)."""
    in_f, B = x_fm.shape
    hid = w1.shape[1]
    out_f = w2.shape[1]
    assert (in_f, hid, out_f) == (IN_F, HID, OUT_F)

    # Pad the batch to a multiple of 128 lanes and view it as (IN_F, R, 128)
    # so the kernel works on full (sublane, lane) vregs.
    B_pad = ((B + LANES - 1) // LANES) * LANES
    if B_pad != B:
        x_fm = jnp.pad(x_fm, ((0, 0), (0, B_pad - B)))
    R = B_pad // LANES
    x3 = x_fm.reshape(IN_F, R, LANES)

    # Tile rows: big enough to amortise the ~0.35us/step overhead, small enough
    # for scoped VMEM on every generation, and (for large B) at least 2 grid
    # steps so the "parallel" axis can shard across v7x's 2 TensorCores.
    if R <= 8:
        tile_rows = R                      # single full-extent tile
    else:
        half = -(-R // 2)                  # ceil(R / 2)  -> >= 2 grid steps
        half = ((half + 7) // 8) * 8       # multiple of 8 sublanes
        tile_rows = min(MAX_TILE_ROWS, half)
    grid = (pl.cdiv(R, tile_rows),)

    w1_flat = jnp.ravel(w1).astype(jnp.float32)      # (IN_F*HID,)
    b1_flat = jnp.ravel(b1).astype(jnp.float32)      # (HID,)
    w2_flat = jnp.ravel(w2).astype(jnp.float32)      # (HID,)
    b2_flat = jnp.ravel(b2).astype(jnp.float32)      # (1,)

    param_bytes = 4 * (w1_flat.size + b1_flat.size + w2_flat.size + b2_flat.size)
    cost = pl.CostEstimate(
        flops=int(B_pad) * (2 * IN_F * HID + 3 * HID),   # tiny: memory-bound
        transcendentals=0,
        bytes_accessed=int(B_pad) * (IN_F + OUT_F) * 4 + param_bytes,
    )

    smem = lambda: pl.BlockSpec(memory_space=pltpu.MemorySpace.SMEM)

    out3 = pl.pallas_call(
        mlp_kernel,
        out_shape=jax.ShapeDtypeStruct((OUT_F, R, LANES), x_fm.dtype),
        grid_spec=pltpu.PrefetchScalarGridSpec(
            num_scalar_prefetch=0,
            grid=grid,
            in_specs=[
                # Dense-vreg, batch-tiled activations.
                pl.BlockSpec((IN_F, tile_rows, LANES), lambda i: (0, i, 0)),
                # Scalar parameter tables resident in SMEM (no padded VMEM tiles).
                smem(), smem(), smem(), smem(),
            ],
            out_specs=pl.BlockSpec((OUT_F, tile_rows, LANES), lambda i: (0, i, 0)),
        ),
        compiler_params=pltpu.CompilerParams(
            dimension_semantics=("parallel",)),
        cost_estimate=cost,
    )(x3, w1_flat, b1_flat, w2_flat, b2_flat)

    # (OUT_F, R, 128) -> (OUT_F, B_pad) -> drop padding -> (B, OUT_F).
    # For OUT_F == 1 this transpose is a free reshape.
    return out3.reshape(OUT_F, B_pad)[:, :B].T


def simple_nn_forward(x, w1, b1, w2, b2):
    """torch-compatible entry: x is (B, 2).  The feature-major layout change is
    done here; callers that can already produce (IN_F, B) input should use
    simple_nn_forward_feature_major to avoid the extra transpose HBM pass."""
    return simple_nn_forward_feature_major(x.T, w1, b1, w2, b2)


def reference_forward(x, w1, b1, w2, b2):
    h = jnp.maximum(x @ w1 + b1, 0.0)
    return h @ w2 + b2


if __name__ == "__main__":
    key = jax.random.PRNGKey(0)
    k_x, k_w1, k_b1, k_w2, k_b2, k_big, k_odd = jax.random.split(key, 7)

    # Parameters (shapes from SimpleNN.__init__, pre-transposed to (in, out)):
    w1 = jax.random.normal(k_w1, (2, 5), dtype=jnp.float32) * 0.5
    b1 = jax.random.normal(k_b1, (1, 5), dtype=jnp.float32) * 0.1
    w2 = jax.random.normal(k_w2, (5, 1), dtype=jnp.float32) * 0.5
    b2 = jax.random.normal(k_b2, (1, 1), dtype=jnp.float32) * 0.1

    # Small spec-consistent batch (single 128-lane tile after padding).
    B = 8
    x = jax.random.normal(k_x, (B, 2), dtype=jnp.float32)
    out = jax.block_until_ready(simple_nn_forward(x, w1, b1, w2, b2))
    ref = reference_forward(x, w1, b1, w2, b2)
    assert out.shape == (B, 1), out.shape
    assert jnp.allclose(out, ref, atol=1e-5, rtol=1e-5), (out, ref)

    # Larger batch: exercises the multi-step (grid > 1), dense-vreg path via
    # the feature-major entry point (no wrapper transpose pass).
    Bb = 4096
    xb_fm = jax.random.normal(k_big, (2, Bb), dtype=jnp.float32)   # (IN_F, B)
    outb = jax.block_until_ready(
        simple_nn_forward_feature_major(xb_fm, w1, b1, w2, b2))
    refb = reference_forward(xb_fm.T, w1, b1, w2, b2)
    assert outb.shape == (Bb, 1), outb.shape
    assert jnp.allclose(outb, refb, atol=1e-5, rtol=1e-5)

    # Odd batch: exercises the pad-to-128 + output-slice path.
    Bo = 1000
    xo = jax.random.normal(k_odd, (Bo, 2), dtype=jnp.float32)
    outo = jax.block_until_ready(simple_nn_forward(xo, w1, b1, w2, b2))
    refo = reference_forward(xo, w1, b1, w2, b2)
    assert outo.shape == (Bo, 1), outo.shape
    assert jnp.allclose(outo, refo, atol=1e-5, rtol=1e-5)

    print("KERNEL_OK")
</pallas_src>

<mosaic_0001>
module attributes {stable_mosaic.version = 11 : i64} {
  func.func @mlp_kernel(%arg0: i32, %arg1: memref<2x1x128xf32, #tpu.memory_space<vmem>>, %arg2: memref<10xf32, #tpu.memory_space<smem>>, %arg3: memref<5xf32, #tpu.memory_space<smem>>, %arg4: memref<5xf32, #tpu.memory_space<smem>>, %arg5: memref<1xf32, #tpu.memory_space<smem>>, %arg6: memref<1x1x128xf32, #tpu.memory_space<vmem>>) attributes {dimension_semantics = [#tpu.dimension_semantics<parallel>], iteration_bounds = array<i64: 1>, scalar_prefetch = 0 : i64, scratch_operands = 0 : i64, tpu.core_type = #tpu.core_type<tc>, window_params = [{transform_indices = @transform_0, window_bounds = array<i64: 2, 1, 128>}, {transform_indices = @transform_1, window_bounds = array<i64: 10>}, {transform_indices = @transform_2, window_bounds = array<i64: 5>}, {transform_indices = @transform_3, window_bounds = array<i64: 5>}, {transform_indices = @transform_4, window_bounds = array<i64: 1>}, {transform_indices = @transform_5, window_bounds = array<i64: 1, 1, 128>}]} {
    %c0 = arith.constant 0 : index
    %0 = memref.load %arg2[%c0] : memref<10xf32, #tpu.memory_space<smem>>
    %c1 = arith.constant 1 : index
    %1 = memref.load %arg2[%c1] : memref<10xf32, #tpu.memory_space<smem>>
    %c2 = arith.constant 2 : index
    %2 = memref.load %arg2[%c2] : memref<10xf32, #tpu.memory_space<smem>>
    %c3 = arith.constant 3 : index
    %3 = memref.load %arg2[%c3] : memref<10xf32, #tpu.memory_space<smem>>
    %c4 = arith.constant 4 : index
    %4 = memref.load %arg2[%c4] : memref<10xf32, #tpu.memory_space<smem>>
    %c5 = arith.constant 5 : index
    %5 = memref.load %arg2[%c5] : memref<10xf32, #tpu.memory_space<smem>>
    %c6 = arith.constant 6 : index
    %6 = memref.load %arg2[%c6] : memref<10xf32, #tpu.memory_space<smem>>
    %c7 = arith.constant 7 : index
    %7 = memref.load %arg2[%c7] : memref<10xf32, #tpu.memory_space<smem>>
    %c8 = arith.constant 8 : index
    %8 = memref.load %arg2[%c8] : memref<10xf32, #tpu.memory_space<smem>>
    %c9 = arith.constant 9 : index
    %9 = memref.load %arg2[%c9] : memref<10xf32, #tpu.memory_space<smem>>
    %c0_0 = arith.constant 0 : index
    %10 = memref.load %arg3[%c0_0] : memref<5xf32, #tpu.memory_space<smem>>
    %c1_1 = arith.constant 1 : index
    %11 = memref.load %arg3[%c1_1] : memref<5xf32, #tpu.memory_space<smem>>
    %c2_2 = arith.constant 2 : index
    %12 = memref.load %arg3[%c2_2] : memref<5xf32, #tpu.memory_space<smem>>
    %c3_3 = arith.constant 3 : index
    %13 = memref.load %arg3[%c3_3] : memref<5xf32, #tpu.memory_space<smem>>
    %c4_4 = arith.constant 4 : index
    %14 = memref.load %arg3[%c4_4] : memref<5xf32, #tpu.memory_space<smem>>
    %c0_5 = arith.constant 0 : index
    %15 = memref.load %arg4[%c0_5] : memref<5xf32, #tpu.memory_space<smem>>
    %c1_6 = arith.constant 1 : index
    %16 = memref.load %arg4[%c1_6] : memref<5xf32, #tpu.memory_space<smem>>
    %c2_7 = arith.constant 2 : index
    %17 = memref.load %arg4[%c2_7] : memref<5xf32, #tpu.memory_space<smem>>
    %c3_8 = arith.constant 3 : index
    %18 = memref.load %arg4[%c3_8] : memref<5xf32, #tpu.memory_space<smem>>
    %c4_9 = arith.constant 4 : index
    %19 = memref.load %arg4[%c4_9] : memref<5xf32, #tpu.memory_space<smem>>
    %c0_10 = arith.constant 0 : index
    %20 = memref.load %arg5[%c0_10] : memref<1xf32, #tpu.memory_space<smem>>
    %c0_11 = arith.constant 0 : index
    %c0_12 = arith.constant 0 : index
    %c0_13 = arith.constant 0 : index
    %21 = vector.load %arg1[%c0_11, %c0_12, %c0_13] : memref<2x1x128xf32, #tpu.memory_space<vmem>>, vector<1x1x128xf32>
    %22 = vector.shape_cast %21 : vector<1x1x128xf32> to vector<1x128xf32>
    %c1_14 = arith.constant 1 : index
    %c0_15 = arith.constant 0 : index
    %c0_16 = arith.constant 0 : index
    %23 = vector.load %arg1[%c1_14, %c0_15, %c0_16] : memref<2x1x128xf32, #tpu.memory_space<vmem>>, vector<1x1x128xf32>
    %24 = vector.shape_cast %23 : vector<1x1x128xf32> to vector<1x128xf32>
    %25 = vector.broadcast %0 : f32 to vector<1x128xf32>
    %26 = arith.mulf %22, %25 : vector<1x128xf32>
    %27 = vector.broadcast %10 : f32 to vector<1x128xf32>
    %28 = arith.addf %26, %27 : vector<1x128xf32>
    %29 = vector.broadcast %5 : f32 to vector<1x128xf32>
    %30 = arith.mulf %24, %29 : vector<1x128xf32>
    %31 = arith.addf %28, %30 : vector<1x128xf32>
    %cst = arith.constant 0.000000e+00 : f32
    %32 = vector.broadcast %cst : f32 to vector<1x128xf32>
    %33 = arith.maximumf %31, %32 : vector<1x128xf32>
    %34 = vector.broadcast %15 : f32 to vector<1x128xf32>
    %35 = arith.mulf %33, %34 : vector<1x128xf32>
    %36 = vector.broadcast %1 : f32 to vector<1x128xf32>
    %37 = arith.mulf %22, %36 : vector<1x128xf32>
    %38 = vector.broadcast %11 : f32 to vector<1x128xf32>
    %39 = arith.addf %37, %38 : vector<1x128xf32>
    %40 = vector.broadcast %6 : f32 to vector<1x128xf32>
    %41 = arith.mulf %24, %40 : vector<1x128xf32>
    %42 = arith.addf %39, %41 : vector<1x128xf32>
    %cst_17 = arith.constant 0.000000e+00 : f32
    %43 = vector.broadcast %cst_17 : f32 to vector<1x128xf32>
    %44 = arith.maximumf %42, %43 : vector<1x128xf32>
    %45 = vector.broadcast %16 : f32 to vector<1x128xf32>
    %46 = arith.mulf %44, %45 : vector<1x128xf32>
    %47 = arith.addf %35, %46 : vector<1x128xf32>
    %48 = vector.broadcast %2 : f32 to vector<1x128xf32>
    %49 = arith.mulf %22, %48 : vector<1x128xf32>
    %50 = vector.broadcast %12 : f32 to vector<1x128xf32>
    %51 = arith.addf %49, %50 : vector<1x128xf32>
    %52 = vector.broadcast %7 : f32 to vector<1x128xf32>
    %53 = arith.mulf %24, %52 : vector<1x128xf32>
    %54 = arith.addf %51, %53 : vector<1x128xf32>
    %cst_18 = arith.constant 0.000000e+00 : f32
    %55 = vector.broadcast %cst_18 : f32 to vector<1x128xf32>
    %56 = arith.maximumf %54, %55 : vector<1x128xf32>
    %57 = vector.broadcast %17 : f32 to vector<1x128xf32>
    %58 = arith.mulf %56, %57 : vector<1x128xf32>
    %59 = arith.addf %47, %58 : vector<1x128xf32>
    %60 = vector.broadcast %3 : f32 to vector<1x128xf32>
    %61 = arith.mulf %22, %60 : vector<1x128xf32>
    %62 = vector.broadcast %13 : f32 to vector<1x128xf32>
    %63 = arith.addf %61, %62 : vector<1x128xf32>
    %64 = vector.broadcast %8 : f32 to vector<1x128xf32>
    %65 = arith.mulf %24, %64 : vector<1x128xf32>
    %66 = arith.addf %63, %65 : vector<1x128xf32>
    %cst_19 = arith.constant 0.000000e+00 : f32
    %67 = vector.broadcast %cst_19 : f32 to vector<1x128xf32>
    %68 = arith.maximumf %66, %67 : vector<1x128xf32>
    %69 = vector.broadcast %18 : f32 to vector<1x128xf32>
    %70 = arith.mulf %68, %69 : vector<1x128xf32>
    %71 = arith.addf %59, %70 : vector<1x128xf32>
    %72 = vector.broadcast %4 : f32 to vector<1x128xf32>
    %73 = arith.mulf %22, %72 : vector<1x128xf32>
    %74 = vector.broadcast %14 : f32 to vector<1x128xf32>
    %75 = arith.addf %73, %74 : vector<1x128xf32>
    %76 = vector.broadcast %9 : f32 to vector<1x128xf32>
    %77 = arith.mulf %24, %76 : vector<1x128xf32>
    %78 = arith.addf %75, %77 : vector<1x128xf32>
    %cst_20 = arith.constant 0.000000e+00 : f32
    %79 = vector.broadcast %cst_20 : f32 to vector<1x128xf32>
    %80 = arith.maximumf %78, %79 : vector<1x128xf32>
    %81 = vector.broadcast %19 : f32 to vector<1x128xf32>
    %82 = arith.mulf %80, %81 : vector<1x128xf32>
    %83 = arith.addf %71, %82 : vector<1x128xf32>
    %84 = vector.broadcast %20 : f32 to vector<1x128xf32>
    %85 = arith.addf %83, %84 : vector<1x128xf32>
    %86 = vector.shape_cast %85 : vector<1x128xf32> to vector<1x1x128xf32>
    %c0_21 = arith.constant 0 : index
    %c0_22 = arith.constant 0 : index
    %c0_23 = arith.constant 0 : index
    %87 = vector.load %arg6[%c0_21, %c0_22, %c0_23] : memref<1x1x128xf32, #tpu.memory_space<vmem>>, vector<1x1x128xf32>
    tpu.vector_store %arg6[%c0_21, %c0_22, %c0_23], %86 {strides = array<i32>} : memref<1x1x128xf32, #tpu.memory_space<vmem>>, vector<1x1x128xf32>,
    return
  }
  func.func @transform_0(%arg0: i32) -> (i32, i32, i32) {
    %c0_i32 = arith.constant 0 : i32
    %c0_i32_0 = arith.constant 0 : i32
    %c0_i32_1 = arith.constant 0 : i32
    return %c0_i32, %arg0, %c0_i32_0 : i32, i32, i32
  }
  func.func @transform_1(%arg0: i32) -> i32 {
    %c0_i32 = arith.constant 0 : i32
    %c0_i32_0 = arith.constant 0 : i32
    return %c0_i32 : i32
  }
  func.func @transform_2(%arg0: i32) -> i32 {
    %c0_i32 = arith.constant 0 : i32
    %c0_i32_0 = arith.constant 0 : i32
    return %c0_i32 : i32
  }
  func.func @transform_3(%arg0: i32) -> i32 {
    %c0_i32 = arith.constant 0 : i32
    %c0_i32_0 = arith.constant 0 : i32
    return %c0_i32 : i32
  }
  func.func @transform_4(%arg0: i32) -> i32 {
    %c0_i32 = arith.constant 0 : i32
    %c0_i32_0 = arith.constant 0 : i32
    return %c0_i32 : i32
  }
  func.func @transform_5(%arg0: i32) -> (i32, i32, i32) {
    %c0_i32 = arith.constant 0 : i32
    %c0_i32_0 = arith.constant 0 : i32
    %c0_i32_1 = arith.constant 0 : i32
    return %c0_i32, %arg0, %c0_i32_0 : i32, i32, i32
  }
}

</mosaic_0001>

<bundles_post_ra>
// kernel: tpu_custom_call.1
= control target key start
LH: loop header
LB: loop body
LE: loop exit
PB: predicated region body
PF: predicated region fallthrough
CT: control target
= control target key end

     0   :  { %11 = vsyncpa [#allocation5], 0  ;;  %s337_s0 = inlined_call_operand.vmem [shape: f32[2,1,128], index: 0, kind: input, shape index: {}]   ;;  %s338_s1 = inlined_call_operand.hbm [shape: f32[10], index: 1, kind: input, shape index: {}]   ;;  %s339_s2 = inlined_call_operand.vmem [shape: f32[5], index: 2, kind: input, shape index: {}]   ;;  %s340_s3 = inlined_call_operand.vmem [shape: f32[5], index: 3, kind: input, shape index: {}]   ;;  %s341_s4 = inlined_call_operand.<no memory space> [shape: f32[1], index: 4, kind: input, shape index: {}]   ;;  %s342_s5 = inlined_call_operand.hbm [shape: f32[1,1,128], index: 5, kind: output, shape index: {}]  }
   0x1   :  { %12 = vsyncpa [#allocation6], 0 }
   0x2   :  { %13 = vsyncpa [#allocation9], 0 }
   0x3   :  { %14 = vsyncpa [#allocation4], 0  ;;  %s22_s20 = sshll.u32 %s338_s1, 4  ;;  %s31_s23 = sshll.u32 %s339_s2, 4  ;;  %s23_s20 = int_to_ptr.hbm [resolvable:$true] %s22_s20  ;;  %s32_s23 = int_to_ptr.vmem [resolvable:$true] %s31_s23 }
   0x4   :  { %s249_s24 = smov [#allocation3]   ;;  %s250_s25 = smov [#allocation7]  }
   0x5   :  { %25 = dma.hbm_to_smem %s23_s20, 16, %s249_s24, [#allocation5]  }
   0x6   :  { %34 = dma.vmem_to_smem %s32_s23, 16, %s250_s25, [#allocation6]  }
   0x7   :  { %s40_s28 = sshll.u32 %s340_s3, 4  ;;  %s251_s29 = smov [#allocation8]   ;;  %s41_s28 = int_to_ptr.vmem [resolvable:$true] %s40_s28 }
   0x8   :  { %43 = dma.vmem_to_smem %s41_s28, 16, %s251_s29, [#allocation9]  }
   0x9   :  { %241 = dma.done.wait [#allocation5], 16  }
   0xa   :  { %242 = vsyncadd [#allocation5], 4294967280 }
   0xb   :  { %243 = dma.done.wait [#allocation6], 16  }
   0xc   :  { %244 = vsyncadd [#allocation6], 4294967280 }
   0xd   :  { %245 = dma.done.wait [#allocation9], 16  }
   0xe   :  { %246 = vsyncadd [#allocation9], 4294967280 }
   0xf   :  { %58 = sfence }
  0x10   :  { %s59_s1 = sld [smem:[#allocation3]]  ;;  %v80_v0 = vld [vmem:[%s337_s0] sm:$0x1]  ;;  %v176_v3 = vld [vmem:[%s337_s0 + $0x1] sm:$0x1]  ;;  %v137_v55 = vstv %s341_s4  ;;  %s252_s27 = smov [#allocation10]  }
  0x11   :  { %s159_s2 = sld [smem:[#allocation3 + $0x1]]  ;;  %s145_s28 = sshll.u32 %s252_s27, 4  ;;  %s146_s28 = int_to_ptr.vmem [resolvable:$true] %s145_s28 }
  0x12   :  { %s160_s30 = sld [smem:[#allocation3 + $0x2]] }
  0x13   :  { %s292_s6 = sld [smem:[#allocation3 + $0x3]] }
  0x14   :  { %s294_s7 = sld [smem:[#allocation3 + $0x4]] }
  0x15   :  { %s163_s8 = sld [smem:[#allocation3 + $0x5]] }
  0x16   :  { %s164_s9 = sld [smem:[#allocation3 + $0x6]]  ;;  %v83_v1 = vstv %s59_s1 }
  0x17   :  { %s296_s3 = sld [smem:[#allocation3 + $0x7]]  ;;  %v93_v2 = vstv %s159_s2  ;;  %v84_v6 = vmul.f32 %v83_v1, %v80_v0  ;;  %s147_s2 = sshll.u32 %s342_s5, 4  ;;  %s148_s2 = int_to_ptr.hbm [resolvable:$true] %s147_s2 }
  0x18   :  { %s298_s10 = sld [smem:[#allocation3 + $0x8]]  ;;  %v104_v5 = vstv %s160_s30  ;;  %v94_v9 = vmul.f32 %v93_v2, %v80_v0 }
  0x19   :  { %s300_s11 = sld [smem:[#allocation3 + $0x9]]  ;;  %v115_v8 = vstv %s292_s6  ;;  %v105_v13 = vmul.f32 %v104_v5, %v80_v0 }
  0x1a   :  { %s69_s12 = sld [smem:[#allocation7]]  ;;  %v126_v11 = vstv %s294_s7  ;;  %v116_v17 = vmul.f32 %v115_v8, %v80_v0 }
  0x1b   :  { %s168_s15 = sld [smem:[#allocation7 + $0x1]]  ;;  %v87_v4 = vstv %s163_s8  ;;  %v127_v22 = vmul.f32 %v126_v11, %v80_v0 }
  0x1c   :  { %s305_s16 = sld [smem:[#allocation7 + $0x2]]  ;;  %v97_v7 = vstv %s164_s9  ;;  %v88_v12 = vmul.f32 %v176_v3, %v87_v4 }
  0x1d   :  { %s310_s19 = sld [smem:[#allocation7 + $0x3]]  ;;  %v108_v10 = vstv %s296_s3  ;;  %v98_v16 = vmul.f32 %v176_v3, %v97_v7 }
  0x1e   :  { %s313_s20 = sld [smem:[#allocation7 + $0x4]]  ;;  %v119_v14 = vstv %s298_s10  ;;  %v109_v21 = vmul.f32 %v176_v3, %v108_v10 }
  0x1f   :  { %s317_s21 = sld [smem:[#allocation8]]  ;;  %v130_v18 = vstv %s300_s11  ;;  %v120_v25 = vmul.f32 %v176_v3, %v119_v14 }
  0x20   :  { %s320_s0 = sld [smem:[#allocation8 + $0x1]]  ;;  %v85_v15 = vstv %s69_s12  ;;  %v131_v29 = vmul.f32 %v176_v3, %v130_v18 }
  0x21   :  { %s323_s22 = sld [smem:[#allocation8 + $0x2]]  ;;  %v86_v19 = vadd.f32 %v85_v15, %v84_v6  ;;  %v95_v20 = vstv %s168_s15 }
  0x22   :  { %s174_s23 = sld [smem:[#allocation8 + $0x3]]  ;;  %v96_v23 = vadd.f32 %v95_v20, %v94_v9  ;;  %v106_v24 = vstv %s305_s16 }
  0x23   :  { %s175_s24 = sld [smem:[#allocation8 + $0x4]]  ;;  %v89_v26 = vadd.f32 %v88_v12, %v86_v19  ;;  %v107_v27 = vadd.f32 %v106_v24, %v105_v13  ;;  %v117_v28 = vstv %s310_s19 }
  0x24   :  { %v99_v30 = vadd.f32 %v98_v16, %v96_v23  ;;  %v118_v31 = vadd.f32 %v117_v28, %v116_v17  ;;  %v128_v32 = vstv %s313_s20 }
  0x25   :  { %v90_v33 = vmax.f32 %v89_v26, 0.0  ;;  %v91_v34 = vstv %s317_s21  ;;  %v110_v35 = vadd.f32 %v109_v21, %v107_v27  ;;  %v129_v36 = vadd.f32 %v128_v32, %v127_v22 }
  0x26   :  { %v100_v37 = vmax.f32 %v99_v30, 0.0  ;;  %v101_v38 = vstv %s320_s0  ;;  %v121_v39 = vadd.f32 %v120_v25, %v118_v31 }
  0x27   :  { %v92_v40 = vmul.f32 %v91_v34, %v90_v33  ;;  %v111_v41 = vmax.f32 %v110_v35, 0.0  ;;  %v112_v42 = vstv %s323_s22  ;;  %v132_v43 = vadd.f32 %v131_v29, %v129_v36 }
  0x28   :  { %v102_v44 = vmul.f32 %v101_v38, %v100_v37  ;;  %v122_v45 = vmax.f32 %v121_v39, 0.0  ;;  %v123_v46 = vstv %s174_s23 }
  0x29   :  { %v113_v47 = vmul.f32 %v112_v42, %v111_v41  ;;  %v133_v48 = vmax.f32 %v132_v43, 0.0  ;;  %v134_v49 = vstv %s175_s24 }
  0x2a   :  { %v103_v50 = vadd.f32 %v102_v44, %v92_v40  ;;  %v124_v51 = vmul.f32 %v123_v46, %v122_v45 }
  0x2b   :  { %v135_v53 = vmul.f32 %v134_v49, %v133_v48 }
  0x2c   :  { %v114_v52 = vadd.f32 %v113_v47, %v103_v50 }
  0x2e   :  { %v125_v54 = vadd.f32 %v124_v51, %v114_v52 }
  0x30   :  { %v136_v56 = vadd.f32 %v135_v53, %v125_v54 }
  0x32   :  { %v138_v57 = vadd.f32 %v137_v55, %v136_v56 }
  0x34   :  { %139 = vst [vmem:[#allocation10] sm:$0x1] %v138_v57 }
  0x35   :  { %150 = dma.vmem_to_hbm [thread:$0]  %s146_s28, 16, %s148_s2, [#allocation4]  }
  0x36   :  { %247 = dma.done.wait [#allocation4], 16  }
  0x37   :  { %248 = vsyncadd [#allocation4], 4294967280 }
  0x38   :  { %155 = vsyncpa [#allocation4], 1 }
  0x39   :  { %156 = vsyncpa [#allocation5], 1 }
  0x3a   :  { %157 = vsyncpa [#allocation6], 1 }
  0x3b   :  { %158 = vsyncpa [#allocation9], 1 }

</bundles_post_ra>
